<compile_context>
chip_gen: v5e
topology: v5e:2x2
jax: 0.10.0
libtpu: 0.0.40
codegen_flags: <defaults>
</compile_context>

<pallas_src>
import functools

import jax
import jax.numpy as jnp
from jax.experimental import pallas as pl
from jax.experimental.pallas import tpu as pltpu


def _round_up(x, m):
    return ((x + m - 1) // m) * m


def _text_cnn_kernel(filter_sizes, n_filters, seq_len, l_pad,
                     x_ref, wc_ref, bc_ref, fw_ref, fb_ref, out_ref):
    """One grid step == one block of Bt batch elements.

    refs:
      x_ref  : [Bt*L_pad, K_pad]  bf16  im2col windows (lane-dense)
      wc_ref : [K_pad, NF_pad]    bf16  fused conv weight (all filter sizes)
      bc_ref : [1, NF_pad]        f32   fused conv bias
      fw_ref : [NF_pad, OUT_pad]  bf16  fc weight (zero-padded)
      fb_ref : [1, OUT_pad]       f32   fc bias   (zero-padded)
      out_ref: [Bt, OUT_pad]      f32
    """
    rows, _ = x_ref.shape
    nf_pad = wc_ref.shape[1]
    bt = rows // l_pad

    # Fused conv for all filter sizes: one MXU matmul, f32 accumulation.
    conv = jnp.dot(x_ref[...], wc_ref[...],
                   preferred_element_type=jnp.float32)        # [rows, NF_pad]
    conv = jnp.maximum(conv + bc_ref[...], 0.0)               # bias + ReLU (f32)
    conv = conv.reshape(bt, l_pad, nf_pad)                    # tile-aligned reshape

    # Mask invalid pooling positions: per filter-size column group, positions
    # l >= L_fs (and the L padding rows) must not contribute to the max.
    # Zero is a neutral lower bound post-ReLU.
    li = jax.lax.broadcasted_iota(jnp.int32, (l_pad, nf_pad), 0)
    ci = jax.lax.broadcasted_iota(jnp.int32, (l_pad, nf_pad), 1)
    thr = jnp.zeros((l_pad, nf_pad), jnp.int32)
    for i, fs in enumerate(filter_sizes):
        l_fs = seq_len - fs + 1
        in_group = (ci >= i * n_filters) & (ci < (i + 1) * n_filters)
        thr = jnp.where(in_group, l_fs, thr)
    mask = (li < thr)[None, :, :]
    conv = jnp.where(mask, conv, 0.0)

    pooled = jnp.max(conv, axis=1)                            # [Bt, NF_pad] f32

    # Single FC matmul; dropout is identity at inference time.
    out = jnp.dot(pooled.astype(fw_ref.dtype), fw_ref[...],
                  preferred_element_type=jnp.float32) + fb_ref[...]
    out_ref[...] = out.astype(out_ref.dtype)


def init_params(key, vocab_size, embedding_dim, n_filters, filter_sizes, output_dim):
    """Deterministic synthetic parameter init (same shapes as the nn.Module)."""
    keys = jax.random.split(key, 2 * len(filter_sizes) + 3)
    params = {}
    params["embedding"] = jax.random.normal(
        keys[0], (vocab_size, embedding_dim), jnp.float32) * 0.1
    for i, fs in enumerate(filter_sizes):
        # PyTorch Conv2d weight is [nf, 1, fs, E]; we keep it as [fs, E, nf].
        params[f"conv_w_{fs}"] = jax.random.normal(
            keys[1 + 2 * i], (fs, embedding_dim, n_filters), jnp.float32) * 0.1
        params[f"conv_b_{fs}"] = jax.random.normal(
            keys[2 + 2 * i], (1, n_filters), jnp.float32) * 0.1
    f_total = len(filter_sizes) * n_filters
    # PyTorch Linear weight is [out_dim, F_total]; we keep it as [F_total, out_dim].
    params["fc_w"] = jax.random.normal(
        keys[-2], (f_total, output_dim), jnp.float32) * 0.1
    params["fc_b"] = jax.random.normal(
        keys[-1], (1, output_dim), jnp.float32) * 0.1
    return params


def text_cnn_forward(text, params, filter_sizes, n_filters, output_dim,
                     block_batch=256):
    """text: [S, B] int32 token ids (same convention as the PyTorch forward)."""
    tokens = text.T.astype(jnp.int32)                 # permute(1, 0) -> [B, S]
    emb_table = params["embedding"]
    E = emb_table.shape[1]
    # TODO(synk): embedding gather + im2col stay in XLA (one [B,L,fs_max*E]
    # HBM round-trip); fusing them into the kernel (scalar-prefetch row gather
    # or one-hot matmul over the tiny vocab) is possible but not done here.
    embedded = emb_table[tokens]                      # [B, S, E] f32
    B, S, _ = embedded.shape

    fs_max = max(filter_sizes)
    fs_min = min(filter_sizes)
    assert S >= fs_max, "sequence shorter than largest filter"

    nfs = len(filter_sizes)
    f_total = nfs * n_filters
    L_win = S - fs_min + 1                            # max #pool positions
    L_pad = _round_up(L_win, 8)                       # sublane-aligned
    K = fs_max * E
    K_pad = _round_up(K, 128)                         # lane-dense matmul K
    NF_pad = _round_up(f_total, 128)
    OUT_pad = _round_up(output_dim, 128)

    # ---- batch blocking: big blocks, but keep >=2 grid steps when possible.
    b8 = _round_up(B, 8)
    Bt = min(block_batch, b8)
    if b8 >= 16:
        Bt = min(Bt, _round_up((b8 + 1) // 2, 8))     # v7x: both TCs get work
    Bt = _round_up(max(Bt, 8), 8)
    B_pad = _round_up(B, Bt)

    # ---- im2col in the wrapper -> lane-dense [B_pad*L_pad, K_pad] bf16.
    S_ext = L_win + fs_max - 1                        # pad seq so fs_max windows exist
    emb_ext = jnp.pad(embedded, ((0, B_pad - B), (0, S_ext - S), (0, 0)))
    windows = jnp.concatenate(
        [emb_ext[:, k:k + L_win, :] for k in range(fs_max)], axis=-1)
    windows = jnp.pad(windows, ((0, 0), (0, L_pad - L_win), (0, K_pad - K)))
    x2d = windows.reshape(B_pad * L_pad, K_pad).astype(jnp.bfloat16)

    # ---- fused conv weight/bias: each filter's [fs*E, nf] block zero-padded
    #      to K_pad rows, concatenated along N (column group i == filter i).
    wc = jnp.zeros((K_pad, NF_pad), jnp.float32)
    bc = jnp.zeros((1, NF_pad), jnp.float32)
    for i, fs in enumerate(filter_sizes):
        w = params[f"conv_w_{fs}"].reshape(fs * E, n_filters)
        wc = wc.at[:fs * E, i * n_filters:(i + 1) * n_filters].set(w)
        bc = bc.at[:, i * n_filters:(i + 1) * n_filters].set(params[f"conv_b_{fs}"])
    wc = wc.astype(jnp.bfloat16)

    fw = jnp.zeros((NF_pad, OUT_pad), jnp.float32)
    fw = fw.at[:f_total, :output_dim].set(params["fc_w"]).astype(jnp.bfloat16)
    fb = jnp.zeros((1, OUT_pad), jnp.float32).at[:, :output_dim].set(params["fc_b"])

    kernel = functools.partial(_text_cnn_kernel, tuple(filter_sizes),
                               n_filters, S, L_pad)

    out = pl.pallas_call(
        kernel,
        out_shape=jax.ShapeDtypeStruct((B_pad, OUT_pad), jnp.float32),
        grid_spec=pltpu.PrefetchScalarGridSpec(
            num_scalar_prefetch=0,
            grid=(B_pad // Bt,),
            in_specs=[
                pl.BlockSpec((Bt * L_pad, K_pad), lambda b: (b, 0)),
                pl.BlockSpec((K_pad, NF_pad), lambda b: (0, 0)),
                pl.BlockSpec((1, NF_pad), lambda b: (0, 0)),
                pl.BlockSpec((NF_pad, OUT_pad), lambda b: (0, 0)),
                pl.BlockSpec((1, OUT_pad), lambda b: (0, 0)),
            ],
            out_specs=pl.BlockSpec((Bt, OUT_pad), lambda b: (b, 0)),
        ),
        compiler_params=pltpu.CompilerParams(
            dimension_semantics=("parallel",)),
    )(x2d, wc, bc, fw, fb)
    return out[:B, :output_dim]


def reference_forward(text, params, filter_sizes, n_filters, output_dim):
    """Plain-JAX f32 reference with identical math (conv-as-shifted-matmuls)."""
    tokens = text.T
    embedded = params["embedding"][tokens]            # [B, S, E]
    S = embedded.shape[1]
    pooled = []
    for fs in filter_sizes:
        w = params[f"conv_w_{fs}"]                    # [fs, E, nf]
        b = params[f"conv_b_{fs}"]                    # [1, nf]
        L = S - fs + 1
        acc = jnp.zeros((embedded.shape[0], L, n_filters), jnp.float32)
        for k in range(fs):
            acc = acc + jnp.einsum("ble,ef->blf", embedded[:, k:k + L, :], w[k])
        conved = jax.nn.relu(acc + b[None, :, :])
        pooled.append(jnp.max(conved, axis=1))        # [B, nf]
    cat = jnp.concatenate(pooled, axis=1)
    return cat @ params["fc_w"] + params["fc_b"]


if __name__ == "__main__":
    vocab_size = 50
    embedding_dim = 32
    n_filters = 8
    filter_sizes = (2, 3, 4)
    output_dim = 3
    seq_len = 10
    batch = 2

    key = jax.random.PRNGKey(0)
    k_params, k_text, k_text2 = jax.random.split(key, 3)
    params = init_params(k_params, vocab_size, embedding_dim, n_filters,
                         filter_sizes, output_dim)

    # PyTorch forward takes text as [seq_len, batch] of token ids.
    text = jax.random.randint(k_text, (seq_len, batch), 0, vocab_size,
                              dtype=jnp.int32)
    out = text_cnn_forward(text, params, filter_sizes, n_filters, output_dim)
    out = jax.block_until_ready(out)
    ref = reference_forward(text, params, filter_sizes, n_filters, output_dim)
    assert out.shape == (batch, output_dim)
    # bf16 MXU inputs -> looser tolerance than a pure-f32 comparison.
    assert jnp.allclose(out, ref, atol=3e-2, rtol=3e-2), "mismatch vs reference"

    # Second shape: odd batch (exercises batch padding and a multi-step grid).
    batch2 = 37
    text2 = jax.random.randint(k_text2, (seq_len, batch2), 0, vocab_size,
                               dtype=jnp.int32)
    out2 = jax.block_until_ready(
        text_cnn_forward(text2, params, filter_sizes, n_filters, output_dim))
    ref2 = reference_forward(text2, params, filter_sizes, n_filters, output_dim)
    assert out2.shape == (batch2, output_dim)
    assert jnp.allclose(out2, ref2, atol=3e-2, rtol=3e-2), "mismatch vs reference (batch2)"

    # TODO(synk): nn.Dropout is a no-op in eval mode; training-mode dropout
    # (random masking + 1/(1-p) scaling) is not implemented here.
    print("KERNEL_OK")
</pallas_src>

<mosaic_0001>
module attributes {stable_mosaic.version = 11 : i64} {
  func.func @_text_cnn_kernel(%arg0: i32, %arg1: memref<128x128xbf16, #tpu.memory_space<vmem>>, %arg2: memref<128x128xbf16, #tpu.memory_space<vmem>>, %arg3: memref<1x128xf32, #tpu.memory_space<vmem>>, %arg4: memref<128x128xbf16, #tpu.memory_space<vmem>>, %arg5: memref<1x128xf32, #tpu.memory_space<vmem>>, %arg6: memref<8x128xf32, #tpu.memory_space<vmem>>) attributes {dimension_semantics = [#tpu.dimension_semantics<parallel>], iteration_bounds = array<i64: 1>, scalar_prefetch = 0 : i64, scratch_operands = 0 : i64, tpu.core_type = #tpu.core_type<tc>, window_params = [{transform_indices = @transform_0, window_bounds = array<i64: 128, 128>}, {pipeline_mode = #tpu.pipeline_mode<synchronous>, transform_indices = @transform_1, window_bounds = array<i64: 128, 128>}, {pipeline_mode = #tpu.pipeline_mode<synchronous>, transform_indices = @transform_2, window_bounds = array<i64: 1, 128>}, {pipeline_mode = #tpu.pipeline_mode<synchronous>, transform_indices = @transform_3, window_bounds = array<i64: 128, 128>}, {pipeline_mode = #tpu.pipeline_mode<synchronous>, transform_indices = @transform_4, window_bounds = array<i64: 1, 128>}, {transform_indices = @transform_5, window_bounds = array<i64: 8, 128>}]} {
    %c0 = arith.constant 0 : index
    %c0_0 = arith.constant 0 : index
    %0 = vector.load %arg1[%c0, %c0_0] : memref<128x128xbf16, #tpu.memory_space<vmem>>, vector<128x128xbf16>
    %c0_1 = arith.constant 0 : index
    %c0_2 = arith.constant 0 : index
    %1 = vector.load %arg2[%c0_1, %c0_2] : memref<128x128xbf16, #tpu.memory_space<vmem>>, vector<128x128xbf16>
    %cst = arith.constant dense<0.000000e+00> : vector<128x128xf32>
    %2 = tpu.matmul %0, %1, %cst {dimension_numbers = #tpu.dot_dimension_numbers<[1], [0], [0], [1], [0, 0, 1, 1], [], []>} : vector<128x128xbf16>, vector<128x128xbf16>, vector<128x128xf32> -> vector<128x128xf32>
    %c0_3 = arith.constant 0 : index
    %c0_4 = arith.constant 0 : index
    %3 = vector.load %arg3[%c0_3, %c0_4] : memref<1x128xf32, #tpu.memory_space<vmem>>, vector<1x128xf32>
    %4 = vector.broadcast %3 : vector<1x128xf32> to vector<128x128xf32>
    %5 = arith.addf %2, %4 : vector<128x128xf32>
    %cst_5 = arith.constant 0.000000e+00 : f32
    %6 = vector.broadcast %cst_5 : f32 to vector<128x128xf32>
    %7 = arith.maximumf %5, %6 : vector<128x128xf32>
    %8 = vector.shape_cast %7 : vector<128x128xf32> to vector<8x16x128xf32>
    %9 = tpu.iota {dimensions = array<i32: 0>} : vector<16x128xi32>
    %10 = tpu.iota {dimensions = array<i32: 1>} : vector<16x128xi32>
    %c0_i32 = arith.constant 0 : i32
    %11 = vector.broadcast %c0_i32 : i32 to vector<16x128xi32>
    %c0_i32_6 = arith.constant 0 : i32
    %12 = vector.broadcast %c0_i32_6 : i32 to vector<16x128xi32>
    %13 = arith.cmpi sge, %10, %12 : vector<16x128xi32>
    %c8_i32 = arith.constant 8 : i32
    %14 = vector.broadcast %c8_i32 : i32 to vector<16x128xi32>
    %15 = arith.cmpi slt, %10, %14 : vector<16x128xi32>
    %16 = arith.andi %13, %15 : vector<16x128xi1>
    %c9_i32 = arith.constant 9 : i32
    %17 = vector.broadcast %c9_i32 : i32 to vector<16x128xi32>
    %18 = arith.select %16, %17, %11 : vector<16x128xi1>, vector<16x128xi32>
    %c8_i32_7 = arith.constant 8 : i32
    %19 = vector.broadcast %c8_i32_7 : i32 to vector<16x128xi32>
    %20 = arith.cmpi sge, %10, %19 : vector<16x128xi32>
    %c16_i32 = arith.constant 16 : i32
    %21 = vector.broadcast %c16_i32 : i32 to vector<16x128xi32>
    %22 = arith.cmpi slt, %10, %21 : vector<16x128xi32>
    %23 = arith.andi %20, %22 : vector<16x128xi1>
    %c8_i32_8 = arith.constant 8 : i32
    %24 = vector.broadcast %c8_i32_8 : i32 to vector<16x128xi32>
    %25 = arith.select %23, %24, %18 : vector<16x128xi1>, vector<16x128xi32>
    %c16_i32_9 = arith.constant 16 : i32
    %26 = vector.broadcast %c16_i32_9 : i32 to vector<16x128xi32>
    %27 = arith.cmpi sge, %10, %26 : vector<16x128xi32>
    %c24_i32 = arith.constant 24 : i32
    %28 = vector.broadcast %c24_i32 : i32 to vector<16x128xi32>
    %29 = arith.cmpi slt, %10, %28 : vector<16x128xi32>
    %30 = arith.andi %27, %29 : vector<16x128xi1>
    %c7_i32 = arith.constant 7 : i32
    %31 = vector.broadcast %c7_i32 : i32 to vector<16x128xi32>
    %32 = arith.select %30, %31, %25 : vector<16x128xi1>, vector<16x128xi32>
    %33 = arith.cmpi slt, %9, %32 : vector<16x128xi32>
    %34 = vector.shape_cast %33 : vector<16x128xi1> to vector<1x16x128xi1>
    %cst_10 = arith.constant 0.000000e+00 : f32
    %35 = vector.shape_cast %34 : vector<1x16x128xi1> to vector<1x16x128xi1>
    %36 = vector.broadcast %35 : vector<1x16x128xi1> to vector<8x16x128xi1>
    %37 = vector.broadcast %cst_10 : f32 to vector<8x16x128xf32>
    %38 = arith.select %36, %8, %37 : vector<8x16x128xi1>, vector<8x16x128xf32>
    %cst_11 = arith.constant dense<0xFF800000> : vector<8x128xf32>
    %39 = vector.multi_reduction <maximumf>, %38, %cst_11 [1] : vector<8x16x128xf32> to vector<8x128xf32>
    %40 = arith.truncf %39 : vector<8x128xf32> to vector<8x128xbf16>
    %c0_12 = arith.constant 0 : index
    %c0_13 = arith.constant 0 : index
    %41 = vector.load %arg4[%c0_12, %c0_13] : memref<128x128xbf16, #tpu.memory_space<vmem>>, vector<128x128xbf16>
    %cst_14 = arith.constant dense<0.000000e+00> : vector<8x128xf32>
    %42 = tpu.matmul %40, %41, %cst_14 {dimension_numbers = #tpu.dot_dimension_numbers<[1], [0], [0], [1], [0, 0, 1, 1], [], []>} : vector<8x128xbf16>, vector<128x128xbf16>, vector<8x128xf32> -> vector<8x128xf32>
    %c0_15 = arith.constant 0 : index
    %c0_16 = arith.constant 0 : index
    %43 = vector.load %arg5[%c0_15, %c0_16] : memref<1x128xf32, #tpu.memory_space<vmem>>, vector<1x128xf32>
    %44 = vector.broadcast %43 : vector<1x128xf32> to vector<8x128xf32>
    %45 = arith.addf %42, %44 : vector<8x128xf32>
    %c0_17 = arith.constant 0 : index
    %c0_18 = arith.constant 0 : index
    %46 = vector.load %arg6[%c0_17, %c0_18] : memref<8x128xf32, #tpu.memory_space<vmem>>, vector<8x128xf32>
    tpu.vector_store %arg6[%c0_17, %c0_18], %45 {strides = array<i32>} : memref<8x128xf32, #tpu.memory_space<vmem>>, vector<8x128xf32>,
    return
  }
  func.func @transform_0(%arg0: i32) -> (i32, i32) {
    %c0_i32 = arith.constant 0 : i32
    %c0_i32_0 = arith.constant 0 : i32
    return %arg0, %c0_i32 : i32, i32
  }
  func.func @transform_1(%arg0: i32) -> (i32, i32) {
    %c0_i32 = arith.constant 0 : i32
    %c0_i32_0 = arith.constant 0 : i32
    %c0_i32_1 = arith.constant 0 : i32
    return %c0_i32, %c0_i32_0 : i32, i32
  }
  func.func @transform_2(%arg0: i32) -> (i32, i32) {
    %c0_i32 = arith.constant 0 : i32
    %c0_i32_0 = arith.constant 0 : i32
    %c0_i32_1 = arith.constant 0 : i32
    return %c0_i32, %c0_i32_0 : i32, i32
  }
  func.func @transform_3(%arg0: i32) -> (i32, i32) {
    %c0_i32 = arith.constant 0 : i32
    %c0_i32_0 = arith.constant 0 : i32
    %c0_i32_1 = arith.constant 0 : i32
    return %c0_i32, %c0_i32_0 : i32, i32
  }
  func.func @transform_4(%arg0: i32) -> (i32, i32) {
    %c0_i32 = arith.constant 0 : i32
    %c0_i32_0 = arith.constant 0 : i32
    %c0_i32_1 = arith.constant 0 : i32
    return %c0_i32, %c0_i32_0 : i32, i32
  }
  func.func @transform_5(%arg0: i32) -> (i32, i32) {
    %c0_i32 = arith.constant 0 : i32
    %c0_i32_0 = arith.constant 0 : i32
    return %arg0, %c0_i32 : i32, i32
  }
}

</mosaic_0001>

<bundles_post_ra>
// kernel: tpu_custom_call.1
= control target key start
LH: loop header
LB: loop body
LE: loop exit
PB: predicated region body
PF: predicated region fallthrough
CT: control target
= control target key end

     0   :  { %10 = vsyncpa [#allocation3], 0  ;;  %s860_s0 = inlined_call_operand.hbm [shape: bf16[128,128], index: 0, kind: input, shape index: {}]   ;;  %s861_s1 = inlined_call_operand.hbm [shape: bf16[128,128], index: 1, kind: input, shape index: {}]   ;;  %s862_s2 = inlined_call_operand.vmem [shape: f32[1,128], index: 2, kind: input, shape index: {}]   ;;  %s863_s3 = inlined_call_operand.hbm [shape: bf16[128,128], index: 3, kind: input, shape index: {}]   ;;  %s864_s4 = inlined_call_operand.vmem [shape: f32[1,128], index: 4, kind: input, shape index: {}]   ;;  %s865_s5 = inlined_call_operand.hbm [shape: f32[8,128], index: 5, kind: output, shape index: {}]  }
   0x1   :  { %11 = vsyncpa [#allocation6], 0 }
   0x2   :  { %12 = vsyncpa [#allocation4], 0  ;;  %s30_s20 = sshll.u32 %s861_s1, 4  ;;  %s747_s21 = smov [#allocation5]   ;;  %s31_s20 = int_to_ptr.hbm [resolvable:$true] %s30_s20 }
   0x3   :  { %s32_s22 = sshll.u32 %s747_s21, 4  ;;  %s17_s25 = sshll.u32 %s860_s0, 4  ;;  %s33_s22 = int_to_ptr.vmem [resolvable:$true] %s32_s22  ;;  %s18_s25 = int_to_ptr.hbm [resolvable:$true] %s17_s25 }
   0x4   :  { %s748_s26 = smov 64   ;;  %s749_s27 = smov 4  }
   0x5   :  { %38 = dma.hbm_to_vmem [thread:$0]  %s31_s20, 1024, %s33_s22, [#allocation6], %s748_s26, %s748_s26, %s749_s27  }
   0x6   :  { %s750_s28 = smov [#allocation2]   ;;  %s45_s7 = sshll.u32 %s863_s3, 4  ;;  %s46_s7 = int_to_ptr.hbm [resolvable:$true] %s45_s7 }
   0x7   :  { %s19_s29 = sshll.u32 %s750_s28, 4  ;;  %s751_s1 = smov [#allocation7]   ;;  %s20_s29 = int_to_ptr.vmem [resolvable:$true] %s19_s29 }
   0x8   :  { %25 = dma.hbm_to_vmem [thread:$0]  %s18_s25, 1024, %s20_s29, [#allocation3], %s748_s26, %s748_s26, %s749_s27  }
   0x9   :  { %s47_s8 = sshll.u32 %s751_s1, 4  ;;  %s48_s8 = int_to_ptr.vmem [resolvable:$true] %s47_s8 }
   0xa   :  { %53 = dma.hbm_to_vmem [thread:$0]  %s46_s7, 1024, %s48_s8, [#allocation6], %s748_s26, %s748_s26, %s749_s27  }
   0xb   :  { %741 = dma.done.wait [#allocation3], 1024  }
   0xc   :  { %742 = vsyncadd [#allocation3], 4294966272 }
   0xd   :  { %743 = dma.done.wait [#allocation6], 2048  }
   0xe   :  { %744 = vsyncadd [#allocation6], 4294965248  ;;  %v611_v0 = vld [vmem:[#allocation5 + $0x38] sm:$0xff]  ;;  %v610_v1 = vld [vmem:[#allocation5 + $0x30] sm:$0xff]  ;;  %v265_v17 = vlaneseq  ;;  %v752_v28 = vmov 0   ;;  %vm404_vm9 = vcmask 1041409  }
   0xf   :  { %200 = vmatpush.bf16.msra.mxu0 %v611_v0  ;;  %620 = vmatpush.bf16.msra.mxu2 %v611_v0  ;;  %v609_v2 = vld [vmem:[#allocation5 + $0x28] sm:$0xff]  ;;  %v608_v3 = vld [vmem:[#allocation5 + $0x20] sm:$0xff]  ;;  %v607_v4 = vld [vmem:[#allocation5 + $0x18] sm:$0xff]  ;;  %vm406_vm10 = vcmask 1042434   ;;  %vm408_vm11 = vcmask 1043459   ;;  %vm410_vm12 = vcmask 1044484  }
  0x10   :  { %621 = vmatpush.bf16.msra.mxu3 %v611_v0  ;;  %v606_v5 = vld [vmem:[#allocation5 + $0x10] sm:$0xff]  ;;  %v605_v6 = vld [vmem:[#allocation5 + $0x8] sm:$0xff]  ;;  %v604_v7 = vld [vmem:[#allocation5] sm:$0xff]  ;;  %v269_v21 = vand.u32 127, %v265_v17  ;;  %v266_v30 = vshrl.u32 %v265_v17, 7  ;;  %vm412_vm13 = vcmask 1045509  }
  0x11   :  { %v596_v8 = vld [vmem:[#allocation2] sm:$0xff]  ;;  %v598_v9 = vld [vmem:[#allocation2 + $0x10] sm:$0xff]  ;;  %v601_v10 = vld [vmem:[#allocation2 + $0x28] sm:$0xff]  ;;  %vm414_vm14 = vcmask 1046534   ;;  %vm416_vm15 = vcmask 1047559   ;;  %s753_s10 = smov [#allocation8]  }
  0x12   :  { %v597_v11 = vld [vmem:[#allocation2 + $0x8] sm:$0xff]  ;;  %v599_v12 = vld [vmem:[#allocation2 + $0x18] sm:$0xff]  ;;  %v602_v13 = vld [vmem:[#allocation2 + $0x30] sm:$0xff]  ;;  %vm271_vm0 = vcmp.lt.s32.totalorder %v269_v21, 8  ;;  %vm274_vm1 = vcmp.ge.s32.totalorder %v269_v21, 8  ;;  %vm275_vm2 = vcmp.lt.s32.totalorder %v269_v21, 16 }
  0x13   :  { %201 = vmatpush.bf16.msra.mxu0 %v610_v1  ;;  %622 = vmatpush.bf16.msra.mxu2 %v610_v1  ;;  %v600_v14 = vld [vmem:[#allocation2 + $0x20] sm:$0xff]  ;;  %v603_v15 = vld [vmem:[#allocation2 + $0x38] sm:$0xff]  ;;  %v618_v26 = vld [vmem:[#allocation7 + $0x30] sm:$0xff]  ;;  %v273_v29 = vsel %vm271_vm0, 9, %v752_v28  ;;  %vm278_vm4 = vcmp.ge.s32.totalorder %v269_v21, 16  ;;  %vm279_vm5 = vcmp.lt.s32.totalorder %v269_v21, 24 }
  0x14   :  { %623 = vmatpush.bf16.msra.mxu3 %v610_v1  ;;  %v619_v22 = vld [vmem:[#allocation7 + $0x38] sm:$0xff]  ;;  %v796_v27 = vld [vmem:[%s862_s2] ss:$0 sm:$0xff]  ;;  %vm276_vm3 = vmand %vm274_vm1, %vm275_vm2  ;;  %v267_v36 = vadd.s32 8, %v266_v30  ;;  %s487_s11 = sshll.u32 %s753_s10, 4  ;;  %s489_s14 = sshll.u32 %s865_s5, 4  ;;  %s488_s11 = int_to_ptr.vmem [resolvable:$true] %s487_s11  ;;  %s490_s14 = int_to_ptr.hbm [resolvable:$true] %s489_s14 }
  0x15   :  { %468 = vmatpush.bf16.msra.mxu1 %v619_v22  ;;  %v277_v33 = vsel %vm276_vm3, 8, %v273_v29  ;;  %vm280_vm6 = vmand %vm278_vm4, %vm279_vm5  ;;  %v617_v35 = vld [vmem:[#allocation7 + $0x28] sm:$0xff]  ;;  %v616_v45 = vld [vmem:[#allocation7 + $0x20] sm:$0xff] }
  0x16   :  { %v281_v38 = vsel %vm280_vm6, 7, %v277_v33  ;;  %v615_v58 = vld [vmem:[#allocation7 + $0x18] sm:$0xff]  ;;  %v613_v22 = vld [vmem:[#allocation7 + $0x8] sm:$0xff] }
  0x17   :  { %202 = vmatpush.bf16.msra.mxu0 %v609_v2  ;;  %624 = vmatpush.bf16.msra.mxu2 %v609_v2  ;;  %vm803_vm7 = vcmp.lt.s32.totalorder %v267_v36, %v281_v38  ;;  %vm808_vm8 = vcmp.lt.s32.totalorder %v266_v30, %v281_v38 }
  0x18   :  { %625 = vmatpush.bf16.msra.mxu3 %v609_v2 }
  0x19   :  { %469 = vmatpush.bf16.msra.mxu1 %v618_v26 }
  0x1b   :  { %203 = vmatpush.bf16.msra.mxu0 %v608_v3  ;;  %626 = vmatpush.bf16.msra.mxu2 %v608_v3 }
  0x1c   :  { %627 = vmatpush.bf16.msra.mxu3 %v608_v3 }
  0x1d   :  { %470 = vmatpush.bf16.msra.mxu1 %v617_v35 }
  0x1f   :  { %204 = vmatpush.bf16.msra.mxu0 %v607_v4  ;;  %628 = vmatpush.bf16.msra.mxu2 %v607_v4 }
  0x20   :  { %629 = vmatpush.bf16.msra.mxu3 %v607_v4 }
  0x21   :  { %471 = vmatpush.bf16.msra.mxu1 %v616_v45 }
  0x23   :  { %205 = vmatpush.bf16.msra.mxu0 %v606_v5  ;;  %630 = vmatpush.bf16.msra.mxu2 %v606_v5 }
  0x24   :  { %631 = vmatpush.bf16.msra.mxu3 %v606_v5 }
  0x25   :  { %472 = vmatpush.bf16.msra.mxu1 %v615_v58 }
  0x27   :  { %206 = vmatpush.bf16.msra.mxu0 %v605_v6  ;;  %632 = vmatpush.bf16.msra.mxu2 %v605_v6 }
  0x28   :  { %633 = vmatpush.bf16.msra.mxu3 %v605_v6 }
  0x2b   :  { %207 = vmatpush.bf16.msra.mxu0 %v604_v7  ;;  %634 = vmatpush.bf16.msra.mxu2 %v604_v7 }
  0x2c   :  { %635 = vmatpush.bf16.msra.mxu3 %v604_v7 }
  0x2e   :  { %208 = vmatmul.bf16.vlgmr.msra.gmra.mxu0 %v596_v8  ;;  %218 = vmatmul.bf16.vlgmr.msra.gmra.mxu2 %v598_v9  ;;  %v614_v8 = vld [vmem:[#allocation7 + $0x10] sm:$0xff] }
  0x2f   :  { %233 = vmatmul.bf16.vlgmr.msra.gmra.mxu3 %v601_v10  ;;  %473 = vmatpush.bf16.msra.mxu1 %v614_v8 }
  0x33   :  { %474 = vmatpush.bf16.msra.mxu1 %v613_v22 }
  0x3e   :  { %213 = vmatmul.bf16.gmra.mxu0 %v597_v11  ;;  %223 = vmatmul.bf16.gmra.mxu2 %v599_v12 }
  0x3f   :  { %238 = vmatmul.bf16.gmra.mxu3 %v602_v13 }
  0x4e   :  { %228 = vmatmul.bf16.gmra.mxu2 %v600_v14 }
  0x4f   :  { %243 = vmatmul.bf16.gmra.mxu3 %v603_v15 }
  0xab   :  { %v209_v16 = vpop.f32.mrf.mxu0 }
  0xac   :  { %v210_v32 = vadd.f32 %v796_v27, %v209_v16 }
  0xae   :  { %v249_v42 = vmax.f32 %v210_v32, 0.0 }
  0xb0   :  { %v288_v55 = vsel %vm808_vm8, %v249_v42, 0.0 }
  0xb1   :  { %v219_v18 = vpop.f32.mrf.mxu2 }
  0xb2   :  { %v234_v19 = vpop.f32.mrf.mxu3  ;;  %v220_v46 = vadd.f32 %v796_v27, %v219_v18 }
  0xb3   :  { %v211_v20 = vpop.f32.mrf.mxu0  ;;  %v235_v56 = vadd.f32 %v796_v27, %v234_v19 }
  0xb4   :  { %v212_v34 = vadd.f32 %v796_v27, %v211_v20  ;;  %v253_v59 = vmax.f32 %v220_v46, 0.0 }
  0xb5   :  { %v259_v6 = vmax.f32 %v235_v56, 0.0 }
  0xb6   :  { %v250_v43 = vmax.f32 %v212_v34, 0.0  ;;  %v292_v9 = vsel %vm808_vm8, %v253_v59, 0.0 }
  0xb7   :  { %v298_v19 = vsel %vm808_vm8, %v259_v6, 0.0 }
  0xb8   :  { %v289_v57 = vsel %vm803_vm7, %v250_v43, 0.0 }
  0xb9   :  { %v221_v23 = vpop.f32.mrf.mxu2  ;;  %v304_v1 = vmax.f32 %v288_v55, %v289_v57 }
  0xba   :  { %v236_v24 = vpop.f32.mrf.mxu3  ;;  %v222_v39 = vadd.f32 %v796_v27, %v221_v23 }
  0xbb   :  { %v214_v25 = vpop.f32.mrf.mxu0  ;;  %v237_v50 = vadd.f32 %v796_v27, %v236_v24  ;;  %v305_v16 = vrot.slane %v304_v1, 4 }
  0xbc   :  { %v215_v31 = vadd.f32 %v796_v27, %v214_v25  ;;  %v254_v51 = vmax.f32 %v222_v39, 0.0 }
  0xbd   :  { %v260_v62 = vmax.f32 %v237_v50, 0.0  ;;  %v306_v32 = vmax.f32 %v304_v1, %v305_v16 }
  0xbe   :  { %v251_v40 = vmax.f32 %v215_v31, 0.0  ;;  %v293_v2 = vsel %vm803_vm7, %v254_v51, 0.0  ;;  %v612_v31 = vld [vmem:[#allocation7] sm:$0xff] }
  0xbf   :  { %v318_v13 = vmax.f32 %v292_v9, %v293_v2  ;;  %v299_v14 = vsel %vm803_vm7, %v260_v62, 0.0  ;;  %475 = vmatpush.bf16.msra.mxu1 %v612_v31  ;;  %v307_v39 = vrot.slane %v306_v32, 2 }
  0xc0   :  { %v290_v52 = vsel %vm808_vm8, %v251_v40, 0.0  ;;  %v339_v23 = vmax.f32 %v298_v19, %v299_v14 }
  0xc1   :  { %v224_v37 = vpop.f32.mrf.mxu2  ;;  %v319_v26 = vrot.slane %v318_v13, 4  ;;  %v308_v50 = vmax.f32 %v306_v32, %v307_v39 }
  0xc2   :  { %v239_v41 = vpop.f32.mrf.mxu3  ;;  %v225_v53 = vadd.f32 %v796_v27, %v224_v37  ;;  %v340_v34 = vrot.slane %v339_v23, 4 }
  0xc3   :  { %v216_v44 = vpop.f32.mrf.mxu0  ;;  %v240_v60 = vadd.f32 %v796_v27, %v239_v41  ;;  %v320_v37 = vmax.f32 %v318_v13, %v319_v26 }
  0xc4   :  { %v217_v48 = vadd.f32 %v796_v27, %v216_v44  ;;  %v255_v3 = vmax.f32 %v225_v53, 0.0  ;;  %v341_v42 = vmax.f32 %v339_v23, %v340_v34 }
  0xc5   :  { %v261_v10 = vmax.f32 %v240_v60, 0.0  ;;  %v321_v45 = vrot.slane %v320_v37, 2 }
  0xc6   :  { %v252_v54 = vmax.f32 %v217_v48, 0.0  ;;  %v294_v17 = vsel %vm808_vm8, %v255_v3, 0.0  ;;  %v342_v56 = vrot.slane %v341_v42, 2 }
  0xc7   :  { %v300_v24 = vsel %vm808_vm8, %v261_v10, 0.0  ;;  %v322_v60 = vmax.f32 %v320_v37, %v321_v45 }
  0xc8   :  { %v291_v61 = vsel %vm803_vm7, %v252_v54, 0.0 }
  0xc9   :  { %v311_v63 = vmax.f32 %v290_v52, %v291_v61  ;;  %v226_v0 = vpop.f32.mrf.mxu2  ;;  %v323_v8 = vrot.slane %v322_v60, 1 }
  0xca   :  { %v227_v4 = vadd.f32 %v796_v27, %v226_v0  ;;  %v241_v5 = vpop.f32.mrf.mxu3 }
  0xcb   :  { %v242_v7 = vadd.f32 %v796_v27, %v241_v5  ;;  %v312_v11 = vrot.slane %v311_v63, 4  ;;  %v324_v49 = vmax.f32 %v322_v60, %v323_v8 }
  0xcc   :  { %v256_v12 = vmax.f32 %v227_v4, 0.0  ;;  %v343_v4 = vmax.f32 %v341_v42, %v342_v56 }
  0xcd   :  { %v262_v15 = vmax.f32 %v242_v7, 0.0  ;;  %v313_v25 = vmax.f32 %v311_v63, %v312_v11  ;;  %v309_v63 = vrot.slane %v308_v50, 1  ;;  %v362_v26 = vpack.c.bf16 %v324_v49, %v324_v49 }
  0xce   :  { %v295_v18 = vsel %vm803_vm7, %v256_v12, 0.0  ;;  %v344_v14 = vrot.slane %v343_v4, 1 }
  0xcf   :  { %v325_v20 = vmax.f32 %v294_v17, %v295_v18  ;;  %v301_v21 = vsel %vm803_vm7, %v262_v15, 0.0  ;;  %v314_v35 = vrot.slane %v313_v25, 2  ;;  %v310_v11 = vmax.f32 %v308_v50, %v309_v63 }
  0xd0   :  { %v346_v29 = vmax.f32 %v300_v24, %v301_v21  ;;  %v345_v22 = vmax.f32 %v343_v4, %v344_v14  ;;  %v398_v37 = vunpack.c.l.b16 %v362_v26 }
  0xd1   :  { %v326_v28 = vrot.slane %v325_v20, 4  ;;  %v229_v30 = vpop.f32.mrf.mxu2  ;;  %v315_v43 = vmax.f32 %v313_v25, %v314_v35 }
  0xd2   :  { %v244_v33 = vpop.f32.mrf.mxu3  ;;  %v347_v38 = vrot.slane %v346_v29, 4  ;;  %v230_v40 = vadd.f32 %v796_v27, %v229_v30 }
  0xd3   :  { %v327_v36 = vmax.f32 %v325_v20, %v326_v28  ;;  %v245_v41 = vadd.f32 %v796_v27, %v244_v33  ;;  %v316_v57 = vrot.slane %v315_v43, 1  ;;  %v360_v20 = vpack.c.bf16 %v310_v11, %v310_v11 }
  0xd4   :  { %v348_v46 = vmax.f32 %v346_v29, %v347_v38  ;;  %v257_v51 = vmax.f32 %v230_v40, 0.0  ;;  %v365_v33 = vpack.c.bf16 %v345_v22, %v345_v22 }
  0xd5   :  { %v328_v44 = vrot.slane %v327_v36, 2  ;;  %v263_v54 = vmax.f32 %v245_v41, 0.0  ;;  %v317_v5 = vmax.f32 %v315_v43, %v316_v57  ;;  %v396_v30 = vunpack.c.l.b16 %v360_v20 }
  0xd6   :  { %v349_v61 = vrot.slane %v348_v46, 2  ;;  %v296_v0 = vsel %vm808_vm8, %v257_v51, 0.0  ;;  %v401_v43 = vunpack.c.l.b16 %v365_v33 }
  0xd7   :  { %v329_v58 = vmax.f32 %v327_v36, %v328_v44  ;;  %v302_v2 = vsel %vm808_vm8, %v263_v54, 0.0  ;;  %v361_v15 = vpack.c.bf16 %v317_v5, %v317_v5  ;;  %v644_v54 = vld [vmem:[%s864_s4] ss:$0 sm:$0xff] }
  0xd8   :  { %v350_v9 = vmax.f32 %v348_v46, %v349_v61 }
  0xd9   :  { %v231_v48 = vpop.f32.mrf.mxu2  ;;  %v330_v6 = vrot.slane %v329_v58, 1  ;;  %v397_v23 = vunpack.c.l.b16 %v361_v15 }
  0xda   :  { %v232_v52 = vadd.f32 %v796_v27, %v231_v48  ;;  %v246_v53 = vpop.f32.mrf.mxu3  ;;  %v351_v18 = vrot.slane %v350_v9, 1 }
  0xdb   :  { %v247_v55 = vadd.f32 %v796_v27, %v246_v53  ;;  %v331_v16 = vmax.f32 %v329_v58, %v330_v6  ;;  %v405_v36 = vsel %vm404_vm9, %v397_v23, %v396_v30 }
  0xdc   :  { %v258_v59 = vmax.f32 %v232_v52, 0.0  ;;  %v352_v29 = vmax.f32 %v350_v9, %v351_v18  ;;  %v407_v42 = vsel %vm406_vm10, %v398_v37, %v405_v36 }
  0xdd   :  { %v264_v62 = vmax.f32 %v247_v55, 0.0  ;;  %v363_v24 = vpack.c.bf16 %v331_v16, %v331_v16 }
  0xde   :  { %v297_v1 = vsel %vm803_vm7, %v258_v59, 0.0  ;;  %v366_v39 = vpack.c.bf16 %v352_v29, %v352_v29 }
  0xdf   :  { %v332_v3 = vmax.f32 %v296_v0, %v297_v1  ;;  %v303_v27 = vsel %vm803_vm7, %v264_v62, 0.0  ;;  %v399_v34 = vunpack.c.l.b16 %v363_v24 }
  0xe0   :  { %v353_v7 = vmax.f32 %v302_v2, %v303_v27  ;;  %v402_v45 = vunpack.c.l.b16 %v366_v39 }
  0xe1   :  { %v333_v10 = vrot.slane %v332_v3, 4  ;;  %v409_v44 = vsel %vm408_vm11, %v399_v34, %v407_v42 }
  0xe2   :  { %v354_v12 = vrot.slane %v353_v7, 4 }
  0xe3   :  { %v334_v13 = vmax.f32 %v332_v3, %v333_v10 }
  0xe4   :  { %v355_v17 = vmax.f32 %v353_v7, %v354_v12 }
  0xe5   :  { %v335_v19 = vrot.slane %v334_v13, 2 }
  0xe6   :  { %v356_v47 = vrot.slane %v355_v17, 2 }
  0xe7   :  { %v336_v21 = vmax.f32 %v334_v13, %v335_v19 }
  0xe8   :  { %v357_v25 = vmax.f32 %v355_v17, %v356_v47 }
  0xe9   :  { %v337_v28 = vrot.slane %v336_v21, 1 }
  0xea   :  { %v358_v31 = vrot.slane %v357_v25, 1 }
  0xeb   :  { %v338_v32 = vmax.f32 %v336_v21, %v337_v28 }
  0xec   :  { %v359_v35 = vmax.f32 %v357_v25, %v358_v31 }
  0xed   :  { %v364_v38 = vpack.c.bf16 %v338_v32, %v338_v32 }
  0xee   :  { %v367_v40 = vpack.c.bf16 %v359_v35, %v359_v35 }
  0xef   :  { %v400_v41 = vunpack.c.l.b16 %v364_v38 }
  0xf0   :  { %v403_v48 = vunpack.c.l.b16 %v367_v40 }
  0xf1   :  { %v411_v46 = vsel %vm410_vm12, %v400_v41, %v409_v44 }
  0xf2   :  { %v413_v50 = vsel %vm412_vm13, %v401_v43, %v411_v46 }
  0xf3   :  { %v415_v51 = vsel %vm414_vm14, %v402_v45, %v413_v50 }
  0xf4   :  { %v417_v52 = vsel %vm416_vm15, %v403_v48, %v415_v51 }
  0xf5   :  { %v418_v53 = vpack.c.b16 %v417_v52, %v417_v52 }
  0xf7   :  { %476 = vmatmul.bf16.vlgmr.msra.gmra.mxu1 %v418_v53 }
 0x174   :  { %v477_v55 = vpop.f32.mrf.mxu1 }
 0x175   :  { %v478_v56 = vadd.f32 %v644_v54, %v477_v55 }
 0x177   :  { %481 = vst [vmem:[#allocation8] sm:$0xff] %v478_v56 }
 0x178   :  { %492 = dma.vmem_to_hbm [thread:$0]  %s488_s11, 128, %s490_s14, [#allocation4]  }
 0x17c   :  { %v479_v57 = vpop.f32.mrf.mxu1 }
 0x17d   :  { %745 = dma.done.wait [#allocation4], 128  }
 0x17e   :  { %746 = vsyncadd [#allocation4], 4294967168 }
 0x17f   :  { %497 = vsyncpa [#allocation3], 1 }
 0x180   :  { %498 = vsyncpa [#allocation6], 1 }
 0x181   :  { %499 = vsyncpa [#allocation4], 1 }

</bundles_post_ra>
